<compile_context>
chip_gen: v7x
topology: tpu7x:2x2x1
jax: 0.10.0
libtpu: 0.0.40
codegen_flags: <defaults>
</compile_context>

<pallas_src>
import functools

import jax
import jax.numpy as jnp
from jax.experimental import pallas as pl
from jax.experimental.pallas import tpu as pltpu


def duration_model_kernel(x_ref, w0_ref, b0_ref, w1_ref, b1_ref, w2_ref, b2_ref,
                          out_ref):
    # x_ref: (TM, I) batch-major tile (exactly as it lives in HBM, f32).
    mm_dtype = w0_ref.dtype

    # Go feature-major in-kernel: (I, TM) with batch on the lane axis.  The XLU
    # transpose and the VPU cast are free here (both units are idle otherwise).
    xt = x_ref[...].T.astype(mm_dtype)

    # hidden_0 + tanh   (H, TM)
    h0 = jnp.tanh(
        jnp.dot(w0_ref[...], xt, preferred_element_type=jnp.float32)
        + b0_ref[...]
    )
    # hidden_1 + tanh   (H, TM)
    h1 = jnp.tanh(
        jnp.dot(w1_ref[...], h0.astype(mm_dtype),
                preferred_element_type=jnp.float32)
        + b1_ref[...]
    )
    # hidden_2 logits   (O, TM)
    logits = (
        jnp.dot(w2_ref[...], h1.astype(mm_dtype),
                preferred_element_type=jnp.float32)
        + b2_ref[...]
    )

    # log_softmax over the feature axis (axis 0 in this feature-major layout):
    # an 8-sublane reduction per lane, output store is lane-dense.
    m = jnp.max(logits, axis=0, keepdims=True)
    shifted = logits - m
    lse = jnp.log(jnp.sum(jnp.exp(shifted), axis=0, keepdims=True))
    out_ref[...] = (shifted - lse).astype(out_ref.dtype)


def _round_up(x, m):
    return ((x + m - 1) // m) * m


def prepare_params(params, matmul_dtype=jnp.bfloat16):
    """One-time conversion (outside the per-call jit): weights in the MXU dtype,
    biases as (F, 1) f32 columns that broadcast along the lane (batch) axis."""
    return {
        "w0": jnp.asarray(params["w0"], matmul_dtype),
        "w1": jnp.asarray(params["w1"], matmul_dtype),
        "w2": jnp.asarray(params["w2"], matmul_dtype),
        "b0": jnp.asarray(params["b0"], jnp.float32).reshape(-1, 1),
        "b1": jnp.asarray(params["b1"], jnp.float32).reshape(-1, 1),
        "b2": jnp.asarray(params["b2"], jnp.float32).reshape(-1, 1),
    }


@functools.partial(jax.jit, static_argnames=("tm", "feature_major_out"))
def duration_model_forward(x, prepared, *, tm=4096, feature_major_out=False):
    """x: (B, input_size) float32, batch-major (no pre-transpose needed).
    prepared: output of prepare_params(). Returns (B, O) f32 log-probs
    (or (O, B) if feature_major_out=True, skipping the output transpose)."""
    w0, b0 = prepared["w0"], prepared["b0"]
    w1, b1 = prepared["w1"], prepared["b1"]
    w2, b2 = prepared["w2"], prepared["b2"]

    B, I = x.shape
    H = w0.shape[0]
    O = w2.shape[0]
    itemsize = jnp.dtype(w0.dtype).itemsize

    # --- batch tile selection -------------------------------------------------
    # VMEM budget per batch column (per lane), conservative:
    #   double-buffered x tile (f32 in) + double-buffered out tile (f32)
    #   + in-kernel transposed/cast copy of x + h0/h1 live f32 + softmax temps.
    per_col_bytes = (2 * I * 4 + 2 * O * 4 + I * (4 + itemsize)
                     + 2 * H * 4 + 4 * O * 4)
    vmem_budget = 12 << 20          # fits v5e's 16 MiB default scoped VMEM
    vmem_cap = max(128, ((vmem_budget // per_col_bytes) // 128) * 128)
    # Megacore: make sure a mid-size batch still yields >= 2 tiles on v7x.
    megacore_cap = max(128, _round_up(-(-B // 2), 128))
    tm = max(128, min(_round_up(tm, 128), vmem_cap, megacore_cap))

    num_tiles = pl.cdiv(B, tm)
    b_pad = num_tiles * tm

    # Pad only when needed (no-op copy avoided when tm | B).
    x_in = x if b_pad == B else jnp.pad(x, ((0, b_pad - B), (0, 0)))

    x_spec = pl.BlockSpec((tm, I), lambda i: (i, 0))
    resident = lambda arr: pl.BlockSpec(arr.shape, lambda i: (0, 0))
    out_spec = pl.BlockSpec((O, tm), lambda i: (0, i))

    cost = pl.CostEstimate(
        flops=2 * b_pad * (I * H + H * H + H * O),
        transcendentals=b_pad * (2 * H + O + 1),
        bytes_accessed=(b_pad * I * 4                              # x tiles in (f32)
                        + (I * H + H * H + H * O) * itemsize       # resident weights
                        + (2 * H + O) * 4                          # resident biases
                        + b_pad * O * 4),                          # output tiles
    )

    out_t = pl.pallas_call(
        duration_model_kernel,
        out_shape=jax.ShapeDtypeStruct((O, b_pad), jnp.float32),
        grid=(num_tiles,),
        in_specs=[
            x_spec,
            resident(w0), resident(b0),
            resident(w1), resident(b1),
            resident(w2), resident(b2),
        ],
        out_specs=out_spec,
        compiler_params=pltpu.CompilerParams(
            dimension_semantics=("parallel",)),
        cost_estimate=cost,
    )(x_in, w0, b0, w1, b1, w2, b2)

    if feature_major_out:
        return out_t[:, :B]                 # (O, B): no extra HBM transpose pass
    return jnp.transpose(out_t)[:B]         # (B, O): matches the PyTorch module


def init_params(key, input_size, hidden_size, output_size):
    """PyTorch-style init: U(-1/sqrt(fan_in), 1/sqrt(fan_in)).
    Weights stored (out_features, in_features), matching nn.Linear.weight."""
    ks = jax.random.split(key, 6)

    def lin(kw, kb, fan_in, fan_out):
        bound = 1.0 / jnp.sqrt(fan_in)
        w = jax.random.uniform(kw, (fan_out, fan_in), jnp.float32, -bound, bound)
        b = jax.random.uniform(kb, (fan_out,), jnp.float32, -bound, bound)
        return w, b

    w0, b0 = lin(ks[0], ks[1], input_size, hidden_size)
    w1, b1 = lin(ks[2], ks[3], hidden_size, hidden_size)
    w2, b2 = lin(ks[4], ks[5], hidden_size, output_size)
    return {"w0": w0, "b0": b0, "w1": w1, "b1": b1, "w2": w2, "b2": b2}


def reference_forward(x, p):
    h0 = jnp.tanh(x @ p["w0"].T + p["b0"])
    h1 = jnp.tanh(h0 @ p["w1"].T + p["b1"])
    logits = h1 @ p["w2"].T + p["b2"]
    return jax.nn.log_softmax(logits, axis=1)


if __name__ == "__main__":
    key = jax.random.PRNGKey(0)
    k_x, k_p = jax.random.split(key)

    batch, input_size, hidden_size, output_size = 8, 16, 32, 8

    x = jax.random.normal(k_x, (batch, input_size), jnp.float32)
    params = init_params(k_p, input_size, hidden_size, output_size)

    ref = reference_forward(x, params)

    # Exact (test-only) path: f32 MXU inputs -> tight tolerance vs reference.
    p_f32 = prepare_params(params, matmul_dtype=jnp.float32)
    out_f32 = jax.block_until_ready(duration_model_forward(x, p_f32))
    assert out_f32.shape == (batch, output_size)
    assert jnp.allclose(out_f32, ref, atol=1e-5, rtol=1e-5)

    # Production path: bf16 MXU inputs with f32 accumulation -> loose tolerance.
    p_bf16 = prepare_params(params, matmul_dtype=jnp.bfloat16)
    out_bf16 = jax.block_until_ready(duration_model_forward(x, p_bf16))
    assert out_bf16.shape == (batch, output_size)
    assert jnp.allclose(out_bf16, ref, atol=5e-2, rtol=5e-2)

    # Feature-major output path (skips the output transpose HBM pass).
    out_fm = jax.block_until_ready(
        duration_model_forward(x, p_bf16, feature_major_out=True))
    assert out_fm.shape == (output_size, batch)
    assert jnp.allclose(out_fm.T, ref, atol=5e-2, rtol=5e-2)

    print("KERNEL_OK")
</pallas_src>

<mosaic_0001>
module attributes {stable_mosaic.version = 11 : i64} {
  func.func @duration_model_kernel(%arg0: i32, %arg1: memref<128x16xf32, #tpu.memory_space<vmem>>, %arg2: memref<32x16xf32, #tpu.memory_space<vmem>>, %arg3: memref<32x1xf32, #tpu.memory_space<vmem>>, %arg4: memref<32x32xf32, #tpu.memory_space<vmem>>, %arg5: memref<32x1xf32, #tpu.memory_space<vmem>>, %arg6: memref<8x32xf32, #tpu.memory_space<vmem>>, %arg7: memref<8x1xf32, #tpu.memory_space<vmem>>, %arg8: memref<8x128xf32, #tpu.memory_space<vmem>>) attributes {dimension_semantics = [#tpu.dimension_semantics<parallel>], iteration_bounds = array<i64: 1>, scalar_prefetch = 0 : i64, scratch_operands = 0 : i64, tpu.core_type = #tpu.core_type<tc>, window_params = [{transform_indices = @transform_0, window_bounds = array<i64: 128, 16>}, {pipeline_mode = #tpu.pipeline_mode<synchronous>, transform_indices = @transform_1, window_bounds = array<i64: 32, 16>}, {pipeline_mode = #tpu.pipeline_mode<synchronous>, transform_indices = @transform_2, window_bounds = array<i64: 32, 1>}, {pipeline_mode = #tpu.pipeline_mode<synchronous>, transform_indices = @transform_3, window_bounds = array<i64: 32, 32>}, {pipeline_mode = #tpu.pipeline_mode<synchronous>, transform_indices = @transform_4, window_bounds = array<i64: 32, 1>}, {pipeline_mode = #tpu.pipeline_mode<synchronous>, transform_indices = @transform_5, window_bounds = array<i64: 8, 32>}, {pipeline_mode = #tpu.pipeline_mode<synchronous>, transform_indices = @transform_6, window_bounds = array<i64: 8, 1>}, {transform_indices = @transform_7, window_bounds = array<i64: 8, 128>}]} {
    %c0 = arith.constant 0 : index
    %c0_0 = arith.constant 0 : index
    %0 = vector.load %arg1[%c0, %c0_0] : memref<128x16xf32, #tpu.memory_space<vmem>>, vector<128x16xf32>
    %1 = tpu.transpose %0, [1, 0] : vector<128x16xf32> -> vector<16x128xf32>
    %c0_1 = arith.constant 0 : index
    %c0_2 = arith.constant 0 : index
    %2 = vector.load %arg2[%c0_1, %c0_2] : memref<32x16xf32, #tpu.memory_space<vmem>>, vector<32x16xf32>
    %cst = arith.constant dense<0.000000e+00> : vector<32x128xf32>
    %3 = tpu.matmul %2, %1, %cst {dimension_numbers = #tpu.dot_dimension_numbers<[1], [0], [0], [1], [0, 0, 1, 1], [], []>} : vector<32x16xf32>, vector<16x128xf32>, vector<32x128xf32> -> vector<32x128xf32>
    %c0_3 = arith.constant 0 : index
    %c0_4 = arith.constant 0 : index
    %4 = vector.load %arg3[%c0_3, %c0_4] : memref<32x1xf32, #tpu.memory_space<vmem>>, vector<32x1xf32>
    %5 = vector.broadcast %4 : vector<32x1xf32> to vector<32x128xf32>
    %6 = arith.addf %3, %5 : vector<32x128xf32>
    %7 = math.tanh %6 : vector<32x128xf32>
    %c0_5 = arith.constant 0 : index
    %c0_6 = arith.constant 0 : index
    %8 = vector.load %arg4[%c0_5, %c0_6] : memref<32x32xf32, #tpu.memory_space<vmem>>, vector<32x32xf32>
    %cst_7 = arith.constant dense<0.000000e+00> : vector<32x128xf32>
    %9 = tpu.matmul %8, %7, %cst_7 {dimension_numbers = #tpu.dot_dimension_numbers<[1], [0], [0], [1], [0, 0, 1, 1], [], []>} : vector<32x32xf32>, vector<32x128xf32>, vector<32x128xf32> -> vector<32x128xf32>
    %c0_8 = arith.constant 0 : index
    %c0_9 = arith.constant 0 : index
    %10 = vector.load %arg5[%c0_8, %c0_9] : memref<32x1xf32, #tpu.memory_space<vmem>>, vector<32x1xf32>
    %11 = vector.broadcast %10 : vector<32x1xf32> to vector<32x128xf32>
    %12 = arith.addf %9, %11 : vector<32x128xf32>
    %13 = math.tanh %12 : vector<32x128xf32>
    %c0_10 = arith.constant 0 : index
    %c0_11 = arith.constant 0 : index
    %14 = vector.load %arg6[%c0_10, %c0_11] : memref<8x32xf32, #tpu.memory_space<vmem>>, vector<8x32xf32>
    %cst_12 = arith.constant dense<0.000000e+00> : vector<8x128xf32>
    %15 = tpu.matmul %14, %13, %cst_12 {dimension_numbers = #tpu.dot_dimension_numbers<[1], [0], [0], [1], [0, 0, 1, 1], [], []>} : vector<8x32xf32>, vector<32x128xf32>, vector<8x128xf32> -> vector<8x128xf32>
    %c0_13 = arith.constant 0 : index
    %c0_14 = arith.constant 0 : index
    %16 = vector.load %arg7[%c0_13, %c0_14] : memref<8x1xf32, #tpu.memory_space<vmem>>, vector<8x1xf32>
    %17 = vector.broadcast %16 : vector<8x1xf32> to vector<8x128xf32>
    %18 = arith.addf %15, %17 : vector<8x128xf32>
    %cst_15 = arith.constant dense<0xFF800000> : vector<128xf32>
    %19 = vector.multi_reduction <maximumf>, %18, %cst_15 [0] : vector<8x128xf32> to vector<128xf32>
    %20 = vector.shape_cast %19 : vector<128xf32> to vector<1x128xf32>
    %21 = vector.broadcast %20 : vector<1x128xf32> to vector<8x128xf32>
    %22 = arith.subf %18, %21 : vector<8x128xf32>
    %23 = math.exp %22 : vector<8x128xf32>
    %cst_16 = arith.constant dense<0.000000e+00> : vector<128xf32>
    %24 = vector.multi_reduction <add>, %23, %cst_16 [0] : vector<8x128xf32> to vector<128xf32>
    %25 = vector.shape_cast %24 : vector<128xf32> to vector<1x128xf32>
    %26 = math.log %25 : vector<1x128xf32>
    %27 = vector.broadcast %26 : vector<1x128xf32> to vector<8x128xf32>
    %28 = arith.subf %22, %27 : vector<8x128xf32>
    %c0_17 = arith.constant 0 : index
    %c0_18 = arith.constant 0 : index
    %29 = vector.load %arg8[%c0_17, %c0_18] : memref<8x128xf32, #tpu.memory_space<vmem>>, vector<8x128xf32>
    tpu.vector_store %arg8[%c0_17, %c0_18], %28 {strides = array<i32>} : memref<8x128xf32, #tpu.memory_space<vmem>>, vector<8x128xf32>,
    return
  }
  func.func @transform_0(%arg0: i32) -> (i32, i32) {
    %c0_i32 = arith.constant 0 : i32
    %c0_i32_0 = arith.constant 0 : i32
    return %arg0, %c0_i32 : i32, i32
  }
  func.func @transform_1(%arg0: i32) -> (i32, i32) {
    %c0_i32 = arith.constant 0 : i32
    %c0_i32_0 = arith.constant 0 : i32
    %c0_i32_1 = arith.constant 0 : i32
    return %c0_i32, %c0_i32_0 : i32, i32
  }
  func.func @transform_2(%arg0: i32) -> (i32, i32) {
    %c0_i32 = arith.constant 0 : i32
    %c0_i32_0 = arith.constant 0 : i32
    %c0_i32_1 = arith.constant 0 : i32
    return %c0_i32, %c0_i32_0 : i32, i32
  }
  func.func @transform_3(%arg0: i32) -> (i32, i32) {
    %c0_i32 = arith.constant 0 : i32
    %c0_i32_0 = arith.constant 0 : i32
    %c0_i32_1 = arith.constant 0 : i32
    return %c0_i32, %c0_i32_0 : i32, i32
  }
  func.func @transform_4(%arg0: i32) -> (i32, i32) {
    %c0_i32 = arith.constant 0 : i32
    %c0_i32_0 = arith.constant 0 : i32
    %c0_i32_1 = arith.constant 0 : i32
    return %c0_i32, %c0_i32_0 : i32, i32
  }
  func.func @transform_5(%arg0: i32) -> (i32, i32) {
    %c0_i32 = arith.constant 0 : i32
    %c0_i32_0 = arith.constant 0 : i32
    %c0_i32_1 = arith.constant 0 : i32
    return %c0_i32, %c0_i32_0 : i32, i32
  }
  func.func @transform_6(%arg0: i32) -> (i32, i32) {
    %c0_i32 = arith.constant 0 : i32
    %c0_i32_0 = arith.constant 0 : i32
    %c0_i32_1 = arith.constant 0 : i32
    return %c0_i32, %c0_i32_0 : i32, i32
  }
  func.func @transform_7(%arg0: i32) -> (i32, i32) {
    %c0_i32 = arith.constant 0 : i32
    %c0_i32_0 = arith.constant 0 : i32
    return %c0_i32, %arg0 : i32, i32
  }
}

</mosaic_0001>

<bundles_post_ra>
// kernel: duration_model_forward.1
= control target key start
LH: loop header
LB: loop body
LE: loop exit
PB: predicated region body
PF: predicated region fallthrough
CT: control target
= control target key end

     0   :  { %vm70_vm0 = vcmask 130048   ;;  %v662_v3 = vmov 0   ;;  %vm248_vm2 = vcmask 261120   ;;  %v663_v61 = vmov 0.0|0.0   ;;  %s858_s0 = inlined_call_operand.vmem [shape: f32[128,16], index: 0, kind: input, shape index: {}]   ;;  %s859_s1 = inlined_call_operand.vmem [shape: f32[32,16], index: 1, kind: input, shape index: {}]   ;;  %s860_s2 = inlined_call_operand.vmem [shape: f32[32,1], index: 2, kind: input, shape index: {}]   ;;  %s861_s4 = inlined_call_operand.vmem [shape: f32[32,1], index: 4, kind: input, shape index: {}]   ;;  %s862_s6 = inlined_call_operand.vmem [shape: f32[8,1], index: 6, kind: input, shape index: {}]   ;;  %s863_s3 = inlined_call_operand.vmem [shape: f32[32,32], index: 3, kind: input, shape index: {}]   ;;  %s864_s5 = inlined_call_operand.vmem [shape: f32[8,32], index: 5, kind: input, shape index: {}]   ;;  %s865_s7 = inlined_call_operand.vmem [shape: f32[8,128], index: 7, kind: output, shape index: {}]  }
   0x1   :  { %v26_v0 = vld [vmem:[%s858_s0] sm:$0xff]  ;;  %v27_v1 = vld [vmem:[%s858_s0 + $0x8] sm:$0xff]  ;;  %vm714_vm1 = vmpackc.low %vm70_vm0, %vm70_vm0  ;;  %640 = vset.pattern.permute.xlu0 %v662_v3  ;;  %641 = vset.pattern.permute.xlu1 %v662_v3  ;;  %vm664_vm3 = vmmov 0   ;;  %v665_v62 = vmov 0.0  }
   0x2   :  { %v574_v4 = vpack.c.bf16 %v27_v1, %v26_v0  ;;  %v28_v5 = vld [vmem:[%s858_s0 + $0x10] sm:$0xff]  ;;  %v29_v6 = vld [vmem:[%s858_s0 + $0x18] sm:$0xff]  ;;  %v42_v8 = vld [vmem:[%s859_s1] sm:$0xff] }
   0x3   :  { %v580_v7 = vpack.c.bf16 %v29_v6, %v28_v5  ;;  %v30_v9 = vld [vmem:[%s858_s0 + $0x20] sm:$0xff]  ;;  %v31_v10 = vld [vmem:[%s858_s0 + $0x28] sm:$0xff]  ;;  %543 = vmatprep.mubr.msk.f32.mxu0 %vm70_vm0, %v42_v8  ;;  %v48_v12 = vld [vmem:[%s860_s2 + $0x10] sm:$0xff] }
   0x4   :  { %576 = vmatprep.subr.msk.bf16.mxu0 %vm714_vm1, %v574_v4  ;;  %v46_v11 = vld [vmem:[%s860_s2] sm:$0xff]  ;;  %62 = vperm.xlu1 %641, %v48_v12   ;;  %v586_v13 = vpack.c.bf16 %v31_v10, %v30_v9  ;;  %v47_v14 = vld [vmem:[%s860_s2 + $0x8] sm:$0xff]  ;;  %v49_v15 = vld [vmem:[%s860_s2 + $0x18] sm:$0xff] }
   0x5   :  { %579 = vmatpush3.bf16.xpose.msk.msra.mxu0 %vm714_vm1, %v574_v4  ;;  %52 = vperm.xlu0 %640, %v46_v11   ;;  %v224_v16 = vld [vmem:[%s861_s4] sm:$0xff]  ;;  %v32_v17 = vld [vmem:[%s858_s0 + $0x30] sm:$0xff]  ;;  %v33_v18 = vld [vmem:[%s858_s0 + $0x38] sm:$0xff] }
   0x6   :  { %582 = vmatprep.subr.msk.bf16.mxu0 %vm714_vm1, %v580_v7  ;;  %v225_v19 = vld [vmem:[%s861_s4 + $0x8] sm:$0xff]  ;;  %v592_v20 = vpack.c.bf16 %v33_v18, %v32_v17  ;;  %v226_v21 = vld [vmem:[%s861_s4 + $0x10] sm:$0xff]  ;;  %v227_v22 = vld [vmem:[%s861_s4 + $0x18] sm:$0xff] }
   0x7   :  { %v351_v23 = vld [vmem:[%s862_s6] sm:$0xff]  ;;  %v35_v25 = vld [vmem:[%s858_s0 + $0x48] sm:$0xff]  ;;  %v36_v27 = vld [vmem:[%s858_s0 + $0x50] sm:$0xff] }
   0x8   :  { %67 = vperm.xlu1 %641, %v49_v15   ;;  %v34_v24 = vld [vmem:[%s858_s0 + $0x40] sm:$0xff]  ;;  %v37_v28 = vld [vmem:[%s858_s0 + $0x58] sm:$0xff]  ;;  %v39_v31 = vld [vmem:[%s858_s0 + $0x68] sm:$0xff] }
   0x9   :  { %57 = vperm.xlu0 %640, %v47_v14   ;;  %v598_v26 = vpack.c.bf16 %v35_v25, %v34_v24  ;;  %v604_v29 = vpack.c.bf16 %v37_v28, %v36_v27  ;;  %v38_v30 = vld [vmem:[%s858_s0 + $0x60] sm:$0xff]  ;;  %v40_v33 = vld [vmem:[%s858_s0 + $0x70] sm:$0xff]  ;;  %v41_v34 = vld [vmem:[%s858_s0 + $0x78] sm:$0xff] }
   0xa   :  { %v610_v32 = vpack.c.bf16 %v39_v31, %v38_v30  ;;  %v616_v35 = vpack.c.bf16 %v41_v34, %v40_v33  ;;  %v43_v36 = vld [vmem:[%s859_s1 + $0x8] sm:$0xff]  ;;  %v44_v37 = vld [vmem:[%s859_s1 + $0x10] sm:$0xff]  ;;  %v45_v38 = vld [vmem:[%s859_s1 + $0x18] sm:$0xff] }
   0xb   :  { %v220_v39 = vld [vmem:[%s863_s3] sm:$0xff]  ;;  %v221_v58 = vld [vmem:[%s863_s3 + $0x8] sm:$0xff]  ;;  %v222_v59 = vld [vmem:[%s863_s3 + $0x10] sm:$0xff] }
   0xc   :  { %235 = vperm.xlu1 %641, %v225_v19   ;;  %557 = vmatprep.mubr.msk.f32.mxu1 %vm248_vm2, %v220_v39  ;;  %v223_v60 = vld [vmem:[%s863_s3 + $0x18] sm:$0xff]  ;;  %v350_v17 = vld [vmem:[%s864_s5] sm:$0xff] }
   0xd   :  { %585 = vmatpush3.bf16.xpose.msk.msra.mxu0 %vm714_vm1, %v580_v7  ;;  %230 = vperm.xlu0 %640, %v224_v16  }
   0xe   :  { %588 = vmatprep.subr.msk.bf16.mxu0 %vm714_vm1, %v586_v13 }
  0x10   :  { %245 = vperm.xlu1 %641, %v227_v22  }
  0x11   :  { %240 = vperm.xlu0 %640, %v226_v21  }
  0x15   :  { %591 = vmatpush3.bf16.xpose.msk.msra.mxu0 %vm714_vm1, %v586_v13  ;;  %354 = vperm.xlu0 %640, %v351_v23  }
  0x16   :  { %594 = vmatprep.subr.msk.bf16.mxu0 %vm714_vm1, %v592_v20 }
  0x1d   :  { %597 = vmatpush3.bf16.xpose.msk.msra.mxu0 %vm714_vm1, %v592_v20 }
  0x1e   :  { %600 = vmatprep.subr.msk.bf16.mxu0 %vm714_vm1, %v598_v26 }
  0x25   :  { %603 = vmatpush3.bf16.xpose.msk.msra.mxu0 %vm714_vm1, %v598_v26 }
  0x26   :  { %606 = vmatprep.subr.msk.bf16.mxu0 %vm714_vm1, %v604_v29 }
  0x2d   :  { %609 = vmatpush3.bf16.xpose.msk.msra.mxu0 %vm714_vm1, %v604_v29 }
  0x2e   :  { %612 = vmatprep.subr.msk.bf16.mxu0 %vm714_vm1, %v610_v32 }
  0x35   :  { %615 = vmatpush3.bf16.xpose.msk.msra.mxu0 %vm714_vm1, %v610_v32 }
  0x36   :  { %618 = vmatprep.subr.msk.bf16.mxu0 %vm714_vm1, %v616_v35 }
  0x3d   :  { %621 = vmatpush3.bf16.xpose.msk.msra.mxu0 %vm714_vm1, %v616_v35 }
  0x44   :  { %544 = vmatmul.mubr.msk.f32.vlgmr.msra.gmra.mrb[0].mxu0 %vm70_vm0, %v43_v36 }
  0x45   :  { %546 = vmatprep.mubr.msk.f32.mxu0 %vm70_vm0, %v44_v37 }
  0x48   :  { %547 = vmatmul.mubr.msk.f32.gmra.mrb[2].mxu0 %vm70_vm0, %v45_v38 }
  0x83   :  { %v63_v41 = vpop.permute.xlu1 %62 }
  0x84   :  { %v53_v40 = vpop.permute.xlu0 %52 }
  0x87   :  { %v68_v47 = vpop.permute.xlu1 %67 }
  0x88   :  { %v58_v42 = vpop.permute.xlu0 %57 }
  0x8b   :  { %v236_v63 = vpop.permute.xlu1 %235 }
  0x8c   :  { %v231_v0 = vpop.permute.xlu0 %230 }
  0x8f   :  { %v246_v5 = vpop.permute.xlu1 %245 }
  0x90   :  { %v241_v7 = vpop.permute.xlu0 %240 }
  0x94   :  { %v355_v18 = vpop.permute.xlu0 %354 }
 0x117   :  { %v545_v43 = vpop.f32.mrb[0].mxu0 }
 0x118   :  { %v203_v44 = vadd.f32 %v545_v43, %v58_v42  ;;  %v197_v45 = vpop.f32.mrb[1].mxu0 }
 0x119   :  { %v198_v46 = vadd.f32 %v197_v45, %v53_v40 }
 0x11a   :  { %642 = vtanh.f32 %v203_v44 }
 0x11b   :  { %644 = vtanh.f32 %v198_v46  ;;  %v548_v48 = vpop.f32.mrb[2].mxu0 }
 0x11c   :  { %v213_v49 = vadd.f32 %v548_v48, %v68_v47  ;;  %v207_v50 = vpop.f32.mrb[3].mxu0 }
 0x11d   :  { %v208_v51 = vadd.f32 %v207_v50, %v63_v41 }
 0x11e   :  { %646 = vtanh.f32 %v213_v49 }
 0x11f   :  { %648 = vtanh.f32 %v208_v51 }
 0x124   :  { %v643_v52 = vpop.eup %642 }
 0x125   :  { %v645_v53 = vpop.eup %644 }
 0x126   :  { %v622_v54 = vpack.c.bf16 %v643_v52, %v645_v53 }
 0x128   :  { %v647_v55 = vpop.eup %646  ;;  %623 = vmatprep.subr.bf16.mxu1 %v622_v54 }
 0x129   :  { %v649_v56 = vpop.eup %648  ;;  %625 = vmatpush3.bf16.msra.mxu1 %v622_v54 }
 0x12a   :  { %v626_v57 = vpack.c.bf16 %v647_v55, %v649_v56 }
 0x12c   :  { %627 = vmatprep.subr.bf16.mxu1 %v626_v57 }
 0x12d   :  { %629 = vmatpush3.bf16.msra.mxu1 %v626_v57 }
 0x12e   :  { %630 = vmatprep.subr.bf16.mxu1 %v663_v61 }
 0x130   :  { %558 = vmatmul.mubr.msk.f32.vlgmr.msra.gmra.mrb[0].mxu1 %vm248_vm2, %v221_v58 }
 0x131   :  { %560 = vmatprep.mubr.msk.f32.mxu1 %vm248_vm2, %v222_v59 }
 0x134   :  { %561 = vmatmul.mubr.msk.f32.gmra.mrb[2].mxu1 %vm248_vm2, %v223_v60 }
 0x135   :  { %571 = vmatprep.mubr.msk.f32.mxu1 %vm664_vm3, %v665_v62 }
 0x203   :  { %v559_v1 = vpop.f32.mrb[0].mxu1 }
 0x204   :  { %v333_v2 = vadd.f32 %v559_v1, %v236_v63  ;;  %v327_v3 = vpop.f32.mrb[1].mxu1 }
 0x205   :  { %v328_v4 = vadd.f32 %v327_v3, %v231_v0 }
 0x206   :  { %650 = vtanh.f32 %v333_v2 }
 0x207   :  { %652 = vtanh.f32 %v328_v4  ;;  %v562_v6 = vpop.f32.mrb[2].mxu1 }
 0x208   :  { %v343_v8 = vadd.f32 %v562_v6, %v246_v5  ;;  %v337_v9 = vpop.f32.mrb[3].mxu1 }
 0x209   :  { %v338_v10 = vadd.f32 %v337_v9, %v241_v7 }
 0x20a   :  { %654 = vtanh.f32 %v343_v8 }
 0x20b   :  { %656 = vtanh.f32 %v338_v10 }
 0x210   :  { %v651_v11 = vpop.eup %650 }
 0x211   :  { %v653_v12 = vpop.eup %652 }
 0x212   :  { %v631_v13 = vpack.c.bf16 %v651_v11, %v653_v12 }
 0x214   :  { %v655_v14 = vpop.eup %654  ;;  %632 = vmatpush3.bf16.msra.mxu1 %v631_v13 }
 0x215   :  { %v657_v15 = vpop.eup %656  ;;  %633 = vmatprep.subr.bf16.mxu1 %v663_v61 }
 0x216   :  { %v634_v16 = vpack.c.bf16 %v655_v14, %v657_v15 }
 0x218   :  { %635 = vmatpush3.bf16.msra.mxu1 %v634_v16 }
 0x21b   :  { %572 = vmatmul.mubr.msk.f32.vlgmr.msra.gmra.mrb[4].mxu1 %vm248_vm2, %v350_v17 }
 0x2ee   :  { %v426_v19 = vpop.f32.mrb[4].mxu1 }
 0x2ef   :  { %v427_v20 = vadd.f32 %v426_v19, %v355_v18  ;;  %v573_v21 = vpop.f32.mrb[5].mxu1 }
 0x2f1   :  { %v430_v22 = vrot.slane %v427_v20, 4 }
 0x2f3   :  { %v431_v23 = vmax.f32 %v427_v20, %v430_v22 }
 0x2f5   :  { %v432_v24 = vrot.slane %v431_v23, 2 }
 0x2f7   :  { %v433_v25 = vmax.f32 %v431_v23, %v432_v24 }
 0x2f9   :  { %v434_v26 = vrot.slane %v433_v25, 1 }
 0x2fb   :  { %v435_v27 = vmax.f32 %v433_v25, %v434_v26 }
 0x2fd   :  { %v436_v28 = vsub.f32 %v427_v20, %v435_v27 }
 0x2ff   :  { %v437_v29 = vmul.f32 1.442695, %v436_v28 }
 0x301   :  { %658 = vpow2.f32 %v437_v29 }
 0x30b   :  { %v659_v30 = vpop.eup %658 }
 0x30c   :  { %v439_v31 = vrot.slane %v659_v30, 4 }
 0x30e   :  { %v440_v32 = vadd.f32 %v659_v30, %v439_v31 }
 0x310   :  { %v441_v33 = vrot.slane %v440_v32, 2 }
 0x312   :  { %v442_v34 = vadd.f32 %v441_v33, %v440_v32 }
 0x314   :  { %v443_v35 = vrot.slane %v442_v34, 1 }
 0x316   :  { %v444_v36 = vadd.f32 %v443_v35, %v442_v34 }
 0x318   :  { %660 = vlog2.f32 %v444_v36 }
 0x322   :  { %v661_v37 = vpop.eup %660 }
 0x323   :  { %v446_v38 = vmul.f32 0.6931472, %v661_v37 }
 0x325   :  { %v447_v39 = vsub.f32 %v436_v28, %v446_v38 }
 0x327   :  { %448 = vst [vmem:[%s865_s7] sm:$0xff] %v447_v39 }

</bundles_post_ra>
